<compile_context>
chip_gen: v7x
topology: tpu7x:2x2x1
jax: 0.10.0
libtpu: 0.0.40
codegen_flags: <defaults>
</compile_context>

<pallas_src>
import functools
import math

import jax
import jax.numpy as jnp
import numpy as np
from jax import lax
from jax.experimental import pallas as pl
from jax.experimental.pallas import tpu as pltpu


# ----------------------------------------------------------------------------
# Fused kernel: projection -> per-slab masked attention -> skip + LayerNorm + ELU
# Block handled per grid step: tile_m slabs x N attention nodes.
# ----------------------------------------------------------------------------
def att_net_kernel(x_ref, w_ref, b_ref, mask_ref, gamma_ref, beta_ref, o_ref,
                   *, C, eps):
    tm, n, cin = x_ref.shape

    # ---- fused q/k/v/skip projection: one (tile_m*N, Cin) @ (Cin, 4C) MXU pass ----
    x2 = x_ref[...].reshape(tm * n, cin)
    proj = jnp.dot(x2, w_ref[...], preferred_element_type=jnp.float32) + b_ref[...]
    # wq/bq were pre-scaled by 1/sqrt(C) in the wrapper, so q is already scaled.
    q = proj[:, 0 * C:1 * C].reshape(tm, n, C)
    k = proj[:, 1 * C:2 * C].reshape(tm, n, C)
    v = proj[:, 2 * C:3 * C].reshape(tm, n, C)
    skip = proj[:, 3 * C:4 * C]                      # stays 2D for the rowwise tail

    # ---- batched per-slab masked attention ----
    # mask[i, j] == 1 iff the edge j (source) -> i (target) exists.  Softmax is
    # normalized per source column j (PyG softmax(alpha, edge_index[0])).
    m_pos = (mask_ref[...] > 0.0)[None, :, :]                        # (1, N, N)
    s = jnp.einsum('mic,mjc->mij', q, k,
                   preferred_element_type=jnp.float32)               # (tm, N, N)
    s = jnp.where(m_pos, s, jnp.float32(-1e30))
    col_max = jnp.max(s, axis=1, keepdims=True)                      # per source j
    e = jnp.where(m_pos, jnp.exp(s - col_max), 0.0)
    denom = jnp.sum(e, axis=1) + 1e-16                               # (tm, N), PyG eps
    inv = pl.reciprocal(denom, approx=False)                         # exact, tiny vector
    v_scaled = v * inv[:, :, None]                                   # fold denom into v
    out = jnp.einsum('mij,mjc->mic', e, v_scaled,
                     preferred_element_type=jnp.float32)             # (tm, N, C)

    # ---- skip-add + LayerNorm(C) + ELU(alpha=1) ----
    h = out.reshape(tm * n, C) + skip
    mean = jnp.mean(h, axis=-1, keepdims=True)
    var = jnp.mean(jnp.square(h - mean), axis=-1, keepdims=True)
    y = (h - mean) * lax.rsqrt(var + eps) * gamma_ref[...] + beta_ref[...]
    y = jnp.where(y > 0, y, jnp.exp(jnp.minimum(y, 0.0)) - 1.0)
    o_ref[...] = y.reshape(tm, n, C)


def att_net_forward(x, att_index, params, *, tile_m=None):
    B, T, N, Cin = x.shape
    C = params["wq"].shape[1]
    M = B * T
    scale = 1.0 / math.sqrt(C)

    # Fold 1/sqrt(C) into the query projection (no per-score scale in the kernel).
    w_cat = jnp.concatenate(
        [params["wq"] * scale, params["wk"], params["wv"], params["ws"]], axis=1)
    b_cat = jnp.concatenate(
        [params["bq"] * scale, params["bk"], params["bv"], params["bs"]], axis=1)

    # Node-level adjacency: mask[i, j] = 1 iff edge j (source) -> i (target).
    # NOTE: .set(1.0) deduplicates repeated edges (the test edge list has none).
    src, dst = att_index[0], att_index[1]
    mask = jnp.zeros((N, N), jnp.float32).at[dst, src].set(1.0)

    # Under torch's .view(N, B, T, C), flat row r is attention node r // M in
    # slab r % M.  Present x to the kernel in (slab, node) order so each grid
    # step sees contiguous (tile_m, N, Cin) blocks and no in-kernel transposes.
    x_perm = jnp.transpose(x.reshape(N, M, Cin), (1, 0, 2))   # (M, N, Cin)

    if tile_m is None:
        tile_m = M // 2 if (M % 2 == 0 and M > 1) else M      # >=2 grid steps
    assert M % tile_m == 0
    grid = (M // tile_m,)

    kernel = functools.partial(att_net_kernel, C=C, eps=1e-5)
    out_perm = pl.pallas_call(
        kernel,
        grid=grid,
        in_specs=[
            pl.BlockSpec((tile_m, N, Cin), lambda i: (i, 0, 0)),
            pl.BlockSpec((Cin, 4 * C), lambda i: (0, 0)),
            pl.BlockSpec((1, 4 * C), lambda i: (0, 0)),
            pl.BlockSpec((N, N), lambda i: (0, 0)),
            pl.BlockSpec((1, C), lambda i: (0, 0)),
            pl.BlockSpec((1, C), lambda i: (0, 0)),
        ],
        out_specs=pl.BlockSpec((tile_m, N, C), lambda i: (i, 0, 0)),
        out_shape=jax.ShapeDtypeStruct((M, N, C), jnp.float32),
        compiler_params=pltpu.CompilerParams(
            dimension_semantics=("parallel",)),
    )(x_perm, w_cat, b_cat, mask, params["gamma"], params["beta"])

    # Undo the (slab, node) permutation: flat row r = node*M + slab -> (B,T,N,C).
    return jnp.transpose(out_perm, (1, 0, 2)).reshape(B, T, N, C)


# ----------------------------------------------------------------------------
# Pure-JAX reference using the original edge-list (segment-op) semantics
# ----------------------------------------------------------------------------
def reference(x, att_index, params):
    B, T, N, Cin = x.shape
    C = params["wq"].shape[1]
    M = B * T
    x_flat = x.reshape(-1, Cin)

    lin = lambda w, b: x_flat @ w + b
    q_n = lin(params["wq"], params["bq"]).reshape(N, M, C)
    k_n = lin(params["wk"], params["bk"]).reshape(N, M, C)
    v_n = lin(params["wv"], params["bv"]).reshape(N, M, C)
    skip = lin(params["ws"], params["bs"]).reshape(B, T, N, C)

    src, dst = att_index[0], att_index[1]
    alpha = jnp.einsum("emc,emc->em", q_n[dst], k_n[src]) / math.sqrt(C)  # (E, M)
    amax = jax.ops.segment_max(alpha, src, num_segments=N)
    a = jnp.exp(alpha - amax[src])
    denom = jax.ops.segment_sum(a, src, num_segments=N) + 1e-16
    w = a / denom[src]
    msg = v_n[src] * w[..., None]
    out = jax.ops.segment_sum(msg, dst, num_segments=N).reshape(B, T, N, C) + skip

    mean = out.mean(-1, keepdims=True)
    var = ((out - mean) ** 2).mean(-1, keepdims=True)
    y = (out - mean) / jnp.sqrt(var + 1e-5)
    y = y * params["gamma"].reshape(C) + params["beta"].reshape(C)
    return jnp.where(y > 0, y, jnp.exp(y) - 1.0)


if __name__ == "__main__":
    B, T, N = 2, 4, 8
    Cin, C = 16, 32          # in_channels=16, out_channels = hid_dim = 32

    key = jax.random.PRNGKey(0)
    kx, kw, ke = jax.random.split(key, 3)
    x = jax.random.normal(kx, (B, T, N, Cin), jnp.float32)

    # deterministic parameter init (shapes from the nn.Linear / LayerNorm defs)
    wkeys = jax.random.split(kw, 8)
    bound = 1.0 / math.sqrt(Cin)

    def init_lin(kw_, kb_):
        w = jax.random.uniform(kw_, (Cin, C), jnp.float32, -bound, bound)
        b = jax.random.uniform(kb_, (1, C), jnp.float32, -bound, bound)
        return w, b

    params = {}
    params["wq"], params["bq"] = init_lin(wkeys[0], wkeys[1])
    params["wk"], params["bk"] = init_lin(wkeys[2], wkeys[3])
    params["wv"], params["bv"] = init_lin(wkeys[4], wkeys[5])
    params["ws"], params["bs"] = init_lin(wkeys[6], wkeys[7])
    params["gamma"] = jnp.ones((1, C), jnp.float32)
    params["beta"] = jnp.zeros((1, C), jnp.float32)

    # deterministic edge list (no duplicate edges by construction)
    adj = np.array(jax.random.bernoulli(ke, 0.4, (N, N)))   # adj[src, dst]
    src_np, dst_np = np.nonzero(adj)
    att_index = jnp.stack([jnp.asarray(src_np, jnp.int32),
                           jnp.asarray(dst_np, jnp.int32)])  # (2, E)

    out = att_net_forward(x, att_index, params)
    jax.block_until_ready(out)

    ref = reference(x, att_index, params)
    # tight tolerance: exact reciprocal in the softmax, all-f32 math
    np.testing.assert_allclose(np.array(out), np.array(ref), rtol=1e-3, atol=1e-3)

    print("KERNEL_OK")
</pallas_src>

<mosaic_0001>
module attributes {stable_mosaic.version = 11 : i64} {
  func.func @att_net_kernel(%arg0: i32, %arg1: memref<4x8x16xf32, #tpu.memory_space<vmem>>, %arg2: memref<16x128xf32, #tpu.memory_space<vmem>>, %arg3: memref<1x128xf32, #tpu.memory_space<vmem>>, %arg4: memref<8x8xf32, #tpu.memory_space<vmem>>, %arg5: memref<1x32xf32, #tpu.memory_space<vmem>>, %arg6: memref<1x32xf32, #tpu.memory_space<vmem>>, %arg7: memref<4x8x32xf32, #tpu.memory_space<vmem>>) attributes {dimension_semantics = [#tpu.dimension_semantics<parallel>], iteration_bounds = array<i64: 2>, scalar_prefetch = 0 : i64, scratch_operands = 0 : i64, tpu.core_type = #tpu.core_type<tc>, window_params = [{transform_indices = @transform_0, window_bounds = array<i64: 4, 8, 16>}, {pipeline_mode = #tpu.pipeline_mode<synchronous>, transform_indices = @transform_1, window_bounds = array<i64: 16, 128>}, {pipeline_mode = #tpu.pipeline_mode<synchronous>, transform_indices = @transform_2, window_bounds = array<i64: 1, 128>}, {pipeline_mode = #tpu.pipeline_mode<synchronous>, transform_indices = @transform_3, window_bounds = array<i64: 8, 8>}, {pipeline_mode = #tpu.pipeline_mode<synchronous>, transform_indices = @transform_4, window_bounds = array<i64: 1, 32>}, {pipeline_mode = #tpu.pipeline_mode<synchronous>, transform_indices = @transform_5, window_bounds = array<i64: 1, 32>}, {transform_indices = @transform_6, window_bounds = array<i64: 4, 8, 32>}]} {
    %c0 = arith.constant 0 : index
    %c0_0 = arith.constant 0 : index
    %c0_1 = arith.constant 0 : index
    %0 = vector.load %arg1[%c0, %c0_0, %c0_1] : memref<4x8x16xf32, #tpu.memory_space<vmem>>, vector<4x8x16xf32>
    %1 = vector.shape_cast %0 : vector<4x8x16xf32> to vector<32x16xf32>
    %c0_2 = arith.constant 0 : index
    %c0_3 = arith.constant 0 : index
    %2 = vector.load %arg2[%c0_2, %c0_3] : memref<16x128xf32, #tpu.memory_space<vmem>>, vector<16x128xf32>
    %cst = arith.constant dense<0.000000e+00> : vector<32x128xf32>
    %3 = tpu.matmul %1, %2, %cst {dimension_numbers = #tpu.dot_dimension_numbers<[1], [0], [0], [1], [0, 0, 1, 1], [], []>} : vector<32x16xf32>, vector<16x128xf32>, vector<32x128xf32> -> vector<32x128xf32>
    %c0_4 = arith.constant 0 : index
    %c0_5 = arith.constant 0 : index
    %4 = vector.load %arg3[%c0_4, %c0_5] : memref<1x128xf32, #tpu.memory_space<vmem>>, vector<1x128xf32>
    %5 = vector.broadcast %4 : vector<1x128xf32> to vector<32x128xf32>
    %6 = arith.addf %3, %5 : vector<32x128xf32>
    %7 = vector.extract_strided_slice %6 {offsets = [0, 0], sizes = [32, 32], strides = [1, 1]} : vector<32x128xf32> to vector<32x32xf32>
    %8 = vector.shape_cast %7 : vector<32x32xf32> to vector<4x8x32xf32>
    %9 = vector.extract_strided_slice %6 {offsets = [0, 32], sizes = [32, 32], strides = [1, 1]} : vector<32x128xf32> to vector<32x32xf32>
    %10 = vector.shape_cast %9 : vector<32x32xf32> to vector<4x8x32xf32>
    %11 = vector.extract_strided_slice %6 {offsets = [0, 64], sizes = [32, 32], strides = [1, 1]} : vector<32x128xf32> to vector<32x32xf32>
    %12 = vector.shape_cast %11 : vector<32x32xf32> to vector<4x8x32xf32>
    %13 = vector.extract_strided_slice %6 {offsets = [0, 96], sizes = [32, 32], strides = [1, 1]} : vector<32x128xf32> to vector<32x32xf32>
    %c0_6 = arith.constant 0 : index
    %c0_7 = arith.constant 0 : index
    %14 = vector.load %arg4[%c0_6, %c0_7] : memref<8x8xf32, #tpu.memory_space<vmem>>, vector<8x8xf32>
    %cst_8 = arith.constant 0.000000e+00 : f32
    %15 = vector.broadcast %cst_8 : f32 to vector<8x8xf32>
    %16 = arith.cmpf ogt, %14, %15 : vector<8x8xf32>
    %17 = vector.shape_cast %16 : vector<8x8xi1> to vector<1x8x8xi1>
    "tpu.trace_start"() <{level = 10 : i32, message = "mic,mjc->mij"}> : () -> ()
    %cst_9 = arith.constant dense<0.000000e+00> : vector<4x8x8xf32>
    %18 = tpu.matmul %8, %10, %cst_9 {dimension_numbers = #tpu.dot_dimension_numbers<[2], [2], [1], [1], [0, 0, 0, 1, 1, 1], [0], [0]>} : vector<4x8x32xf32>, vector<4x8x32xf32>, vector<4x8x8xf32> -> vector<4x8x8xf32>
    %cst_10 = arith.constant -1.000000e+30 : f32
    "tpu.trace_stop"() : () -> ()
    %19 = vector.shape_cast %17 : vector<1x8x8xi1> to vector<1x8x8xi1>
    %20 = vector.broadcast %19 : vector<1x8x8xi1> to vector<4x8x8xi1>
    %21 = vector.broadcast %cst_10 : f32 to vector<4x8x8xf32>
    %22 = arith.select %20, %18, %21 : vector<4x8x8xi1>, vector<4x8x8xf32>
    %cst_11 = arith.constant dense<0xFF800000> : vector<4x8xf32>
    %23 = vector.multi_reduction <maximumf>, %22, %cst_11 [1] : vector<4x8x8xf32> to vector<4x8xf32>
    %24 = vector.shape_cast %23 : vector<4x8xf32> to vector<4x1x8xf32>
    %25 = vector.broadcast %24 : vector<4x1x8xf32> to vector<4x8x8xf32>
    %26 = arith.subf %22, %25 : vector<4x8x8xf32>
    %27 = math.exp %26 : vector<4x8x8xf32>
    %cst_12 = arith.constant 0.000000e+00 : f32
    %28 = vector.shape_cast %17 : vector<1x8x8xi1> to vector<1x8x8xi1>
    %29 = vector.broadcast %28 : vector<1x8x8xi1> to vector<4x8x8xi1>
    %30 = vector.broadcast %cst_12 : f32 to vector<4x8x8xf32>
    %31 = arith.select %29, %27, %30 : vector<4x8x8xi1>, vector<4x8x8xf32>
    %cst_13 = arith.constant dense<0.000000e+00> : vector<4x8xf32>
    %32 = vector.multi_reduction <add>, %31, %cst_13 [1] : vector<4x8x8xf32> to vector<4x8xf32>
    %cst_14 = arith.constant 1.000000e-16 : f32
    %33 = vector.broadcast %cst_14 : f32 to vector<4x8xf32>
    %34 = arith.addf %32, %33 : vector<4x8xf32>
    %35 = tpu.reciprocal %34 : vector<4x8xf32> -> vector<4x8xf32>
    %36 = vector.shape_cast %35 : vector<4x8xf32> to vector<4x8x1xf32>
    %37 = vector.broadcast %36 : vector<4x8x1xf32> to vector<4x8x32xf32>
    %38 = arith.mulf %12, %37 : vector<4x8x32xf32>
    "tpu.trace_start"() <{level = 10 : i32, message = "mij,mjc->mic"}> : () -> ()
    %cst_15 = arith.constant dense<0.000000e+00> : vector<4x8x32xf32>
    %39 = tpu.matmul %31, %38, %cst_15 {dimension_numbers = #tpu.dot_dimension_numbers<[2], [1], [1], [2], [0, 0, 0, 1, 1, 2], [0], [0]>} : vector<4x8x8xf32>, vector<4x8x32xf32>, vector<4x8x32xf32> -> vector<4x8x32xf32>
    "tpu.trace_stop"() : () -> ()
    %40 = vector.shape_cast %39 : vector<4x8x32xf32> to vector<32x32xf32>
    %41 = arith.addf %40, %13 : vector<32x32xf32>
    %cst_16 = arith.constant dense<0.000000e+00> : vector<32xf32>
    %42 = vector.multi_reduction <add>, %41, %cst_16 [1] : vector<32x32xf32> to vector<32xf32>
    %43 = vector.shape_cast %42 : vector<32xf32> to vector<32x1xf32>
    %cst_17 = arith.constant 3.200000e+01 : f32
    %44 = vector.broadcast %cst_17 : f32 to vector<32x1xf32>
    %45 = arith.divf %43, %44 : vector<32x1xf32>
    %46 = vector.broadcast %45 : vector<32x1xf32> to vector<32x32xf32>
    %47 = arith.subf %41, %46 : vector<32x32xf32>
    %48 = arith.mulf %47, %47 : vector<32x32xf32>
    %cst_18 = arith.constant dense<0.000000e+00> : vector<32xf32>
    %49 = vector.multi_reduction <add>, %48, %cst_18 [1] : vector<32x32xf32> to vector<32xf32>
    %50 = vector.shape_cast %49 : vector<32xf32> to vector<32x1xf32>
    %cst_19 = arith.constant 3.200000e+01 : f32
    %51 = vector.broadcast %cst_19 : f32 to vector<32x1xf32>
    %52 = arith.divf %50, %51 : vector<32x1xf32>
    %53 = vector.broadcast %45 : vector<32x1xf32> to vector<32x32xf32>
    %54 = arith.subf %41, %53 : vector<32x32xf32>
    %cst_20 = arith.constant 9.99999974E-6 : f32
    %55 = vector.broadcast %cst_20 : f32 to vector<32x1xf32>
    %56 = arith.addf %52, %55 : vector<32x1xf32>
    %57 = math.rsqrt %56 : vector<32x1xf32>
    %58 = vector.broadcast %57 : vector<32x1xf32> to vector<32x32xf32>
    %59 = arith.mulf %54, %58 : vector<32x32xf32>
    %c0_21 = arith.constant 0 : index
    %c0_22 = arith.constant 0 : index
    %60 = vector.load %arg5[%c0_21, %c0_22] : memref<1x32xf32, #tpu.memory_space<vmem>>, vector<1x32xf32>
    %61 = vector.broadcast %60 : vector<1x32xf32> to vector<32x32xf32>
    %62 = arith.mulf %59, %61 : vector<32x32xf32>
    %c0_23 = arith.constant 0 : index
    %c0_24 = arith.constant 0 : index
    %63 = vector.load %arg6[%c0_23, %c0_24] : memref<1x32xf32, #tpu.memory_space<vmem>>, vector<1x32xf32>
    %64 = vector.broadcast %63 : vector<1x32xf32> to vector<32x32xf32>
    %65 = arith.addf %62, %64 : vector<32x32xf32>
    %cst_25 = arith.constant 0.000000e+00 : f32
    %66 = vector.broadcast %cst_25 : f32 to vector<32x32xf32>
    %67 = arith.cmpf ogt, %65, %66 : vector<32x32xf32>
    %cst_26 = arith.constant 0.000000e+00 : f32
    %68 = vector.broadcast %cst_26 : f32 to vector<32x32xf32>
    %69 = arith.minimumf %65, %68 : vector<32x32xf32>
    %70 = math.exp %69 : vector<32x32xf32>
    %cst_27 = arith.constant 1.000000e+00 : f32
    %71 = vector.broadcast %cst_27 : f32 to vector<32x32xf32>
    %72 = arith.subf %70, %71 : vector<32x32xf32>
    %73 = arith.select %67, %65, %72 : vector<32x32xi1>, vector<32x32xf32>
    %74 = vector.shape_cast %73 : vector<32x32xf32> to vector<4x8x32xf32>
    %c0_28 = arith.constant 0 : index
    %c0_29 = arith.constant 0 : index
    %c0_30 = arith.constant 0 : index
    %75 = vector.load %arg7[%c0_28, %c0_29, %c0_30] : memref<4x8x32xf32, #tpu.memory_space<vmem>>, vector<4x8x32xf32>
    tpu.vector_store %arg7[%c0_28, %c0_29, %c0_30], %74 {strides = array<i32>} : memref<4x8x32xf32, #tpu.memory_space<vmem>>, vector<4x8x32xf32>,
    return
  }
  func.func @transform_0(%arg0: i32) -> (i32, i32, i32) {
    %c0_i32 = arith.constant 0 : i32
    %c0_i32_0 = arith.constant 0 : i32
    %c0_i32_1 = arith.constant 0 : i32
    return %arg0, %c0_i32, %c0_i32_0 : i32, i32, i32
  }
  func.func @transform_1(%arg0: i32) -> (i32, i32) {
    %c0_i32 = arith.constant 0 : i32
    %c0_i32_0 = arith.constant 0 : i32
    %c0_i32_1 = arith.constant 0 : i32
    return %c0_i32, %c0_i32_0 : i32, i32
  }
  func.func @transform_2(%arg0: i32) -> (i32, i32) {
    %c0_i32 = arith.constant 0 : i32
    %c0_i32_0 = arith.constant 0 : i32
    %c0_i32_1 = arith.constant 0 : i32
    return %c0_i32, %c0_i32_0 : i32, i32
  }
  func.func @transform_3(%arg0: i32) -> (i32, i32) {
    %c0_i32 = arith.constant 0 : i32
    %c0_i32_0 = arith.constant 0 : i32
    %c0_i32_1 = arith.constant 0 : i32
    return %c0_i32, %c0_i32_0 : i32, i32
  }
  func.func @transform_4(%arg0: i32) -> (i32, i32) {
    %c0_i32 = arith.constant 0 : i32
    %c0_i32_0 = arith.constant 0 : i32
    %c0_i32_1 = arith.constant 0 : i32
    return %c0_i32, %c0_i32_0 : i32, i32
  }
  func.func @transform_5(%arg0: i32) -> (i32, i32) {
    %c0_i32 = arith.constant 0 : i32
    %c0_i32_0 = arith.constant 0 : i32
    %c0_i32_1 = arith.constant 0 : i32
    return %c0_i32, %c0_i32_0 : i32, i32
  }
  func.func @transform_6(%arg0: i32) -> (i32, i32, i32) {
    %c0_i32 = arith.constant 0 : i32
    %c0_i32_0 = arith.constant 0 : i32
    %c0_i32_1 = arith.constant 0 : i32
    return %arg0, %c0_i32, %c0_i32_0 : i32, i32, i32
  }
}

</mosaic_0001>

<bundles_post_ra>
// kernel: tpu_custom_call.1
= control target key start
LH: loop header
LB: loop body
LE: loop exit
PB: predicated region body
PF: predicated region fallthrough
CT: control target
= control target key end

     0   :  { %11 = vsyncpa [#allocation3], 0  ;;  %s2066_s0 = inlined_call_operand.hbm [shape: f32[8,8,16], index: 0, kind: input, shape index: {}]   ;;  %s2067_s1 = inlined_call_operand.hbm [shape: f32[16,128], index: 1, kind: input, shape index: {}]   ;;  %s2068_s2 = inlined_call_operand.vmem [shape: f32[1,128], index: 2, kind: input, shape index: {}]   ;;  %s2069_s3 = inlined_call_operand.vmem [shape: f32[8,8], index: 3, kind: input, shape index: {}]   ;;  %s2070_s4 = inlined_call_operand.vmem [shape: f32[1,32], index: 4, kind: input, shape index: {}]   ;;  %s2071_s5 = inlined_call_operand.vmem [shape: f32[1,32], index: 5, kind: input, shape index: {}]   ;;  %s2072_s6 = inlined_call_operand.hbm [shape: f32[8,8,32], index: 6, kind: output, shape index: {}]  }
   0x1   :  { %13 = vsyncpa [#allocation3 + $0x1], 0 }
   0x2   :  { %14 = vsyncpa [#allocation6], 0 }
   0x3   :  { %15 = vsyncpa [#allocation4], 0 }
   0x4   :  { %17 = vsyncpa [#allocation4 + $0x1], 0  ;;  %s1728_s21 = smov 0   ;;  %s1730_s22 = smov 0  }
   0x5   :  { %s1732_s23 = smov 0   ;;  %s1734_s24 = smov 0  }
   0x6 LB: > { %s1749_s25 = sadd.s32 4294967295, %s1679_s24   ;;  %s1336_s26 = sadd.s32 4294967294, %s1679_s24   ;;  %s1679_s24 = sphi %s1734_s24, %s2092_s24   ;;  %s1675_s23 = sphi %s1732_s23, %s2091_s23   ;;  %s1671_s22 = sphi %s1730_s22, %s2090_s22   ;;  %s1667_s21 = sphi %s1728_s21, %s2089_s21  }
   0x7   : > { %p43_p0 = scmp.ne.s32.totalorder %s1671_s22, %s1667_s21  ;;  %p2073_p1 = scmp.eq.s32.totalorder %s1749_s25, 0 }
   0x8   : > { %p178_p3 = scmp.eq.s32.totalorder %s1336_s26, 1  ;;  %p1337_p5 = scmp.ge.s32.totalorder %s1679_s24, 1 }
   0x9   : > { %p1758_p4 = por %p2073_p1, %p43_p0  ;;  %p185_p7 = scmp.lt.s32.totalorder %s1679_s24, 3 }
   0xa   : > { %p1763_p6 = por %p178_p3, %p43_p0  ;;  %s1681_s30 = smov [#allocation5]  }
   0xb   : > { %s2076_s27 = scalar_select %p1758_p4, 1, 0 }
   0xc   : > { %s2077_s28 = scalar_select %p1763_p6, 1, 0 }
   0xd   : > { %p1768_p8 = pnand %p1337_p5, %p185_p7  ;;  %s197_s7 = sshll.u32 %s1681_s30, 4  ;;  %s1772_s7 = int_to_ptr.vmem [resolvable:$true] %s197_s7 }
   0xe   : > { %s1784_s9 = sadd.s32 1, %s1679_s24   ;;  %s30_s10 = sadd.s32 1, %s1675_s23 }
   0xf   : > { %s2078_s29 = scalar_select %p1768_p8, 1, 0 }
  0x10   : > { %p1461_p9 = pneg %p1768_p8  ;;  %s27_s11 = ssub.s32 %s1679_s24, %s1784_s9 }
  0x11   : > { %s1551_s14 = scalar_lea.hbm %s2067_s1, 256 }
  0x12   : > { %p1779_p11 = pnand %p1461_p9, %p2073_p1  ;;  %p1552_p12 = scmp.ne.s32.totalorder %s2067_s1, %s1551_s14 }
  0x13   : > { %p1558_p5 = scmp.lt.u32.totalorder %s1551_s14, %s2067_s1 }
  0x14   : > { %p1553_p13 = pneg %p1779_p11 }
  0x16   : > { %p1554_p0 = pnand %p1553_p13, %p1552_p12 }
  0x18   : > { %p1555_p3 = pneg %p1554_p0 }
  0x1a   : > { %p1560_p7 = pnand %p1558_p5, %p1555_p3 }
  0x1c   : > { %1563 = shalt.err (!%p1560_p7)
}
  0x1d   : > { %s1564_s19 = scalar_lea.vmem %s1772_s7, 256  ;;  %p1572_p2 = scmp.lt.s32.totalorder %s1772_s7, %s1772_s7 }
  0x1e   : > { %p1565_p9 = scmp.ne.s32.totalorder %s1772_s7, %s1564_s19  ;;  %p1573_p6 = scmp.lt.s32.totalorder %s1564_s19, %s1564_s19 }
  0x20   : > { %p1567_p10 = pnand %p1565_p9, %p1553_p13  ;;  %p1574_p4 = por %p1573_p6, %p1572_p2 }
  0x22   : > { %p1568_p1 = pneg %p1567_p10 }
  0x24   : > { %p1575_p8 = pnand %p1574_p4, %p1568_p1 }
  0x26   : > { %1578 = shalt.err (!%p1575_p8)
}
  0x27   : > { %s1682_s20 = smov 128   ;;  %s1683_s26 = smov 8  }
  0x28   : > { %1464 = dma.hbm_to_vmem [thread:$0]  (!%p1779_p11), %s2067_s1, 256, %s1772_s7, [#allocation6], %s1682_s20, %s1682_s20, %s1683_s26  }
  0x29   : > { %p28_p1 = scmp.eq.s32.totalorder %s27_s11, 0  ;;  %p37_p2 = scmp.ne.s32.totalorder %s1675_s23, %s1671_s22 }
  0x2a   : > { %p38_p4 = scmp.eq.s32.totalorder %s1679_s24, 0  ;;  %p1474_p6 = scmp.lt.s32.totalorder %s1679_s24, 2 }
  0x2b   : > { %s1818_s13 = scalar_select %p28_p1, %s1675_s23, %s30_s10  }
  0x2c   : > { %p39_p8 = por %p38_p4, %p37_p2  ;;  %p2080_p10 = scmp.eq.s32.totalorder %s1749_s25, 1 }
  0x2d   : > { %s223_s8 = sand.u32 1, %s1675_s23   ;;  %s1375_s15 = sshll.u32 %s1679_s24, 9 }
  0x2e   : > { %p1822_p12 = por %p2080_p10, %p37_p2  ;;  %s1340_s16 = sshll.u32 %s223_s8, 5 }
  0x2f   : > { %s1831_s19 = scalar_lea.hbm %s2066_s0, %s1375_s15  ;;  %s227_s7 = scalar_lea.vmem [#allocation2], %s1340_s16 }
  0x30   : > { %s234_s10 = sshll.u32 %s227_s7, 4  ;;  %p1833_p11 = pnand %p1474_p6, %p39_p8  ;;  %s1837_s10 = int_to_ptr.vmem [resolvable:$true] %s234_s10 }
  0x31   : > { %s1839_s30 = scalar_lea.sflag [#allocation3], %s223_s8  ;;  %s1579_s12 = scalar_lea.hbm %s1831_s19, 512 }
  0x32   : > { %p1580_p13 = scmp.ne.s32.totalorder %s1831_s19, %s1579_s12  ;;  %p1581_p0 = pneg %p1833_p11 }
  0x33   : > { %s1584_s17 = scalar_lea.hbm %s2066_s0, 1024  ;;  %p1585_p7 = scmp.lt.u32.totalorder %s1831_s19, %s2066_s0 }
  0x34   : > { %p1582_p3 = pnand %p1581_p0, %p1580_p13  ;;  %p1586_p9 = scmp.lt.u32.totalorder %s1584_s17, %s1579_s12 }
  0x35   : > { %p1588_p2 = scmp.lt.u32.totalorder %s1579_s12, %s1831_s19 }
  0x36   : > { %p1583_p5 = pneg %p1582_p3  ;;  %p1587_p1 = por %p1586_p9, %p1585_p7 }
  0x38   : > { %p1589_p4 = por %p1588_p2, %p1587_p1 }
  0x3a   : > { %p1590_p6 = pnand %p1589_p4, %p1583_p5 }
  0x3c   : > { %1593 = shalt.err (!%p1590_p6)
}
  0x3d   : > { %s1594_s8 = scalar_lea.vmem %s1837_s10, 512  ;;  %s1684_s15 = smov [#allocation2]  }
  0x3e   : > { %p1595_p8 = scmp.ne.s32.totalorder %s1837_s10, %s1594_s8  ;;  %s1599_s16 = sshll.u32 %s1684_s15, 4  ;;  %s1600_s16 = int_to_ptr.vmem [resolvable:$false] %s1599_s16 }
  0x3f   : > { %s1601_s18 = scalar_lea.vmem %s1600_s16, 1024  ;;  %p1602_p3 = scmp.lt.s32.totalorder %s1837_s10, %s1600_s16 }
  0x40   : > { %p1597_p10 = pnand %p1595_p8, %p1581_p0  ;;  %p1603_p7 = scmp.lt.s32.totalorder %s1601_s18, %s1594_s8 }
  0x42   : > { %p1598_p13 = pneg %p1597_p10  ;;  %p1604_p9 = por %p1603_p7, %p1602_p3 }
  0x44   : > { %p1605_p1 = pnand %p1604_p9, %p1598_p13 }
  0x46   : > { %1608 = shalt.err (!%p1605_p1)
}
  0x47   : > { %1468 = dma.hbm_to_vmem [thread:$0]  (!%p1833_p11), %s1831_s19, 512, %s1837_s10, %s1839_s30, %s1682_s20, %s1682_s20, %s1683_s26  }
  0x48   : > { %p2083_p0 = scmp.ne.s32.totalorder %s2078_s29, 0 }
  0x49   : > { %s1873_s12 = sand.u32 (!%p2083_p0), 1, %s1671_s22   ;;  %p2084_p5 = scmp.ne.s32.totalorder (!%p2083_p0), %s2076_s27, 0 }
  0x4a   : > { %246 = sbr.rel (%p2083_p0) target bundleno = 1495 (0x5d7), region = 44  ;;  %s1344_s17 = sshll.u32 (!%p2083_p0), %s1873_s12, 5 }
  0x4b   : > { %s249_s7 = scalar_lea.sflag (!%p2083_p0), [#allocation3], %s1873_s12  ;;  %s252_s11 = scalar_lea.vmem (!%p2083_p0), [#allocation2], %s1344_s17 }
  0x51   : > { %1654 = dma.done.wait (%p2084_p5), %s249_s7, 512  }
  0x52   : > { %1656 = vsyncadd (%p2084_p5), %s249_s7, 4294966784  ;;  %p2085_p11 = scmp.eq.s32.totalorder %s1749_s25, 0 }
  0x54   : > { %1658 = dma.done.wait (%p2085_p11), [#allocation6], 256   ;;  %p2086_p2 = pmov %p2085_p11 }
  0x55   : > { %vm300_vm0 = vcmask 130048   ;;  %v291_v0 = vld [vmem:[#allocation5] sm:$0xff]  ;;  %v292_v1 = vld [vmem:[#allocation5 + $0x8] sm:$0xff]  ;;  %v289_v5 = vld [vmem:[%s252_s11 + $0x10] sm:$0xff]  ;;  %v1685_v7 = vmov 0.0   ;;  %vm1686_vm1 = vmmov 0  }
  0x56   : > { %1660 = vsyncadd (%p2086_p2), [#allocation6], 4294967040  ;;  %v287_v2 = vld [vmem:[%s252_s11] sm:$0xff]  ;;  %v1449_v3 = vpack.c.bf16 %v292_v1, %v291_v0  ;;  %v288_v4 = vld [vmem:[%s252_s11 + $0x8] sm:$0xff]  ;;  %1409 = vmatprep.subr.mxu1 %v1685_v7  ;;  %1411 = vmatprep.mubr.msk.f32.mxu1 %vm1686_vm1, %v1685_v7  ;;  %s1687_s20 = smov 96   ;;  %vm403_vm2 = vcmask 261120  }
  0x57   : > { %1403 = vmatprep.mubr.msk.f32.mxu0 %vm300_vm0, %v287_v2  ;;  %v290_v6 = vld [vmem:[%s252_s11 + $0x18] sm:$0xff]  ;;  %v1347_v8 = vld [vmem:[%s2068_s2] ss:$0 sm:$0xff]  ;;  %vm715_vm4 = vcmask 64512   ;;  %s1688_s10 = smov 64   ;;  %s1689_s30 = smov 32  }
  0x58   : > { %1450 = vmatprep.subr.bf16.mxu0 %v1449_v3  ;;  %v1935_v21 = vld [vmem:[%s2069_s3] sm:$0xff]  ;;  %s284_s7 = scalar_lea.vmem [#allocation7], %s1344_s17  ;;  %s1376_s11 = sshll.u32 %s1749_s25, 9 }
  0x59   : > { %1452 = vmatpush3.bf16.msra.mxu0 %v1449_v3  ;;  %vm399_vm3 = vcmp.gt.f32.partialorder %v1935_v21, 0.0  ;;  %s1253_s27 = sshll.u32 %s284_s7, 4  ;;  %s1240_s25 = scalar_lea.sflag [#allocation4], %s1873_s12  ;;  %s2021_s27 = int_to_ptr.vmem [resolvable:$true] %s1253_s27 }
  0x5a   : > { %1419 = vmatprep.subr.mxu0 %v1685_v7  ;;  %s1609_s26 = scalar_lea.vmem %s2021_s27, 512  ;;  %s1690_s19 = smov [#allocation7]  }
  0x5b   : > { %p1610_p4 = scmp.ne.s32.totalorder %s2021_s27, %s1609_s26 }
  0x5c   : > { %1404 = vmatmul.mubr.msk.f32.vlgmr.msra.gmra.mrb[0].mxu0 %vm300_vm0, %v288_v4 }
  0x5d   : > { %1406 = vmatprep.mubr.msk.f32.mxu0 %vm300_vm0, %v289_v5  ;;  %p1611_p6 = pnand %p1610_p4, %p1822_p12 }
  0x5f   : > { %p1612_p8 = pneg %p1611_p6 }
  0x60   : > { %1407 = vmatmul.mubr.msk.f32.gmra.mrb[2].mxu0 %vm300_vm0, %v290_v6 }
  0x61   : > { %1421 = vmatprep.mubr.msk.f32.mxu0 %vm1686_vm1, %v1685_v7 }
 0x12f   : > { %v1405_v9 = vpop.f32.mrb[0].mxu0 }
 0x130   : > { %v379_v10 = vpop.f32.mrb[1].mxu0  ;;  %v1899_v14 = vadd.f32 %v1405_v9, %v1347_v8 }
 0x131   : > { %v1896_v11 = vadd.f32 %v1347_v8, %v379_v10 }
 0x133   : > { %v1408_v12 = vpop.f32.mrb[2].mxu0  ;;  %401 = vrot.lane.b32.xlu0 %v1896_v11, %s1687_s20 }
 0x134   : > { %v389_v13 = vpop.f32.mrb[3].mxu0  ;;  %v1905_v16 = vadd.f32 %v1408_v12, %v1347_v8 }
 0x135   : > { %v1901_v15 = vadd.f32 %v1347_v8, %v389_v13 }
 0x137   : > { %556 = vrot.lane.b32.xlu1 %v1901_v15, %s1687_s20  ;;  %479 = vrot.lane.b32.xlu0 %v1899_v14, %s1687_s20 }
 0x13b   : > { %633 = vrot.lane.b32.xlu1 %v1905_v16, %s1687_s20  ;;  %s2019_s20 = scalar_lea.hbm %s2072_s6, %s1376_s11 }
 0x1a5   : > { %v402_v17 = vpop.permute.xlu0 %401 }
 0x1a6   : > { %1410 = vmatpush3.xpose.msk.msra.mxu1 %vm403_vm2, %v402_v17 }
 0x1a7   : > { %1414 = vmatprep.subr.mxu1 %v1685_v7 }
 0x1a9   : > { %v557_v18 = vpop.permute.xlu1 %556  ;;  %1412 = vmatmul.mubr.msk.f32.vlgmr.msra.gmra.mrb[0].mxu1 %vm403_vm2, %v1896_v11  ;;  %v480_v19 = vpop.permute.xlu0 %479 }
 0x1aa   : > { %1415 = vmatpush3.xpose.msk.msra.mxu1 %vm403_vm2, %v480_v19  ;;  %1420 = vmatpush3.xpose.msk.msra.mxu0 %vm403_vm2, %v557_v18 }
 0x1ab   : > { %1416 = vmatprep.mubr.msk.f32.mxu1 %vm1686_vm1, %v1685_v7  ;;  %1424 = vmatprep.subr.mxu1 %v1685_v7 }
 0x1ac   : > { %1429 = vmatprep.subr.mxu0 %v1685_v7 }
 0x1ad   : > { %1422 = vmatmul.mubr.msk.f32.vlgmr.msra.gmra.mrb[4].mxu0 %vm403_vm2, %v1901_v15  ;;  %v634_v20 = vpop.permute.xlu1 %633  ;;  %1417 = vmatmul.mubr.msk.f32.vlgmr.msra.gmra.mrb[2].mxu1 %vm403_vm2, %v1899_v14 }
 0x1ae   : > { %1425 = vmatpush3.xpose.msk.msra.mxu1 %vm403_vm2, %v634_v20  ;;  %1426 = vmatprep.mubr.msk.f32.mxu1 %vm1686_vm1, %v1685_v7 }
 0x1af   : > { %1431 = vmatprep.mubr.msk.f32.mxu0 %vm1686_vm1, %v1685_v7  ;;  %1434 = vmatprep.subr.mxu1 %v1685_v7 }
 0x1b1   : > { %1427 = vmatmul.mubr.msk.f32.vlgmr.msra.gmra.mrb[4].mxu1 %vm403_vm2, %v1905_v16 }
 0x1b2   : > { %1436 = vmatprep.mubr.msk.f32.mxu1 %vm1686_vm1, %v1685_v7 }
 0x27c   : > { %v474_v22 = vpop.f32.mrb[0].mxu1 }
 0x27d   : > { %v711_v23 = vsel %vm399_vm3, %v474_v22, -1e+30  ;;  %v1413_v24 = vpop.f32.mrb[1].mxu1 }
 0x27e   : > { %v716_v25 = vsel %vm715_vm4, %v711_v23, -inf }
 0x27f   : > { %v717_v26 = vrot.slane %v716_v25, 4 }
 0x280   : > { %v551_v27 = vpop.f32.mrb[2].mxu1  ;;  %v628_v28 = vpop.f32.mrb[4].mxu0 }
 0x281   : > { %v718_v29 = vmax.f32 %v716_v25, %v717_v26  ;;  %v712_v30 = vsel %vm399_vm3, %v551_v27, -1e+30  ;;  %v713_v31 = vsel %vm399_vm3, %v628_v28, -1e+30  ;;  %v1418_v32 = vpop.f32.mrb[3].mxu1  ;;  %v1423_v33 = vpop.f32.mrb[5].mxu0 }
 0x282   : > { %v723_v34 = vsel %vm715_vm4, %v712_v30, -inf  ;;  %v730_v35 = vsel %vm715_vm4, %v713_v31, -inf }
 0x283   : > { %v719_v36 = vrot.slane %v718_v29, 2  ;;  %v724_v37 = vrot.slane %v723_v34, 4  ;;  %v731_v38 = vrot.slane %v730_v35, 4 }
 0x284   : > { %v705_v39 = vpop.f32.mrb[4].mxu1 }
 0x285   : > { %v720_v40 = vmax.f32 %v718_v29, %v719_v36  ;;  %v725_v41 = vmax.f32 %v723_v34, %v724_v37  ;;  %v732_v42 = vmax.f32 %v730_v35, %v731_v38  ;;  %v714_v43 = vsel %vm399_vm3, %v705_v39, -1e+30  ;;  %v1428_v44 = vpop.f32.mrb[5].mxu1 }
 0x286   : > { %v737_v45 = vsel %vm715_vm4, %v714_v43, -inf }
 0x287   : > { %v721_v46 = vrot.slane %v720_v40, 1  ;;  %v726_v47 = vrot.slane %v725_v41, 2  ;;  %v733_v48 = vrot.slane %v732_v42, 2  ;;  %v738_v49 = vrot.slane %v737_v45, 4 }
 0x289   : > { %v722_v50 = vmax.f32 %v720_v40, %v721_v46  ;;  %v727_v51 = vmax.f32 %v725_v41, %v726_v47  ;;  %v734_v52 = vmax.f32 %v732_v42, %v733_v48  ;;  %v739_v53 = vmax.f32 %v737_v45, %v738_v49 }
 0x28b   : > { %v744_v54 = vsub.f32 %v711_v23, %v722_v50  ;;  %v728_v55 = vrot.slane %v727_v51, 1  ;;  %v735_v56 = vrot.slane %v734_v52, 1  ;;  %v740_v57 = vrot.slane %v739_v53, 2 }
 0x28d   : > { %v748_v58 = vmul.f32 1.442695, %v744_v54  ;;  %v729_v59 = vmax.f32 %v727_v51, %v728_v55  ;;  %v736_v60 = vmax.f32 %v734_v52, %v735_v56  ;;  %v741_v61 = vmax.f32 %v739_v53, %v740_v57 }
 0x28f   : > { %1519 = vpow2.f32 %v748_v58  ;;  %v745_v62 = vsub.f32 %v712_v30, %v729_v59  ;;  %v746_v63 = vsub.f32 %v713_v31, %v736_v60  ;;  %v742_v0 = vrot.slane %v741_v61, 1 }
 0x291   : > { %v750_v1 = vmul.f32 1.442695, %v745_v62  ;;  %v752_v2 = vmul.f32 1.442695, %v746_v63  ;;  %v743_v3 = vmax.f32 %v741_v61, %v742_v0 }
 0x293   : > { %1521 = vpow2.f32 %v750_v1  ;;  %v747_v4 = vsub.f32 %v714_v43, %v743_v3 }
 0x294   : > { %1523 = vpow2.f32 %v752_v2 }
 0x295   : > { %v754_v5 = vmul.f32 1.442695, %v747_v4 }
 0x297   : > { %1525 = vpow2.f32 %v754_v5 }
 0x299   : > { %v1520_v6 = vpop.eup %1519 }
 0x29a   : > { %v1952_v8 = vsel %vm399_vm3, %v1520_v6, 0.0 }
 0x29b   : > { %v760_v9 = vsel %vm715_vm4, %v1952_v8, 0.0 }
 0x29c   : > { %v761_v10 = vrot.slane %v760_v9, 4 }
 0x29d   : > { %v1522_v12 = vpop.eup %1521 }
 0x29e   : > { %v1524_v13 = vpop.eup %1523  ;;  %v1958_v17 = vsel %vm399_vm3, %v1522_v12, 0.0  ;;  %v762_v18 = vadd.f32 %v761_v10, %v760_v9 }
 0x29f   : > { %v767_v19 = vsel %vm715_vm4, %v1958_v17, 0.0  ;;  %v1964_v20 = vsel %vm399_vm3, %v1524_v13, 0.0 }
 0x2a0   : > { %v768_v22 = vrot.slane %v767_v19, 4  ;;  %v774_v23 = vsel %vm715_vm4, %v1964_v20, 0.0  ;;  %v763_v24 = vrot.slane %v762_v18, 2 }
 0x2a1   : > { %v1526_v25 = vpop.eup %1525  ;;  %v775_v26 = vrot.slane %v774_v23, 4 }
 0x2a2   : > { %v1970_v27 = vsel %vm399_vm3, %v1526_v25, 0.0  ;;  %v764_v28 = vadd.f32 %v763_v24, %v762_v18  ;;  %v769_v29 = vadd.f32 %v768_v22, %v767_v19 }
 0x2a3   : > { %v781_v30 = vsel %vm715_vm4, %v1970_v27, 0.0  ;;  %v776_v31 = vadd.f32 %v775_v26, %v774_v23 }
 0x2a4   : > { %v782_v32 = vrot.slane %v781_v30, 4  ;;  %v765_v33 = vrot.slane %v764_v28, 1  ;;  %v770_v34 = vrot.slane %v769_v29, 2 }
 0x2a5   : > { %v777_v35 = vrot.slane %v776_v31, 2 }
 0x2a6   : > { %v766_v36 = vadd.f32 %v765_v33, %v764_v28  ;;  %v771_v37 = vadd.f32 %v770_v34, %v769_v29  ;;  %v783_v38 = vadd.f32 %v782_v32, %v781_v30 }
 0x2a7   : > { %v778_v39 = vadd.f32 %v777_v35, %v776_v31 }
 0x2a8   : > { %v788_v40 = vadd.f32 1e-16, %v766_v36  ;;  %v772_v41 = vrot.slane %v771_v37, 1  ;;  %v784_v42 = vrot.slane %v783_v38, 2 }
 0x2a9   : > { %v779_v21 = vrot.slane %v778_v39, 1 }
 0x2aa   : > { %1527 = vrcp.f32 %v788_v40  ;;  %v773_v43 = vadd.f32 %v772_v41, %v771_v37  ;;  %v785_v44 = vadd.f32 %v784_v42, %v783_v38 }
 0x2ab   : > { %v780_v45 = vadd.f32 %v779_v21, %v778_v39 }
 0x2ac   : > { %v789_v46 = vadd.f32 1e-16, %v773_v43  ;;  %v786_v47 = vrot.slane %v785_v44, 1 }
 0x2ad   : > { %v790_v48 = vadd.f32 1e-16, %v780_v45 }
 0x2ae   : > { %1529 = vrcp.f32 %v789_v46  ;;  %v787_v49 = vadd.f32 %v786_v47, %v785_v44 }
 0x2af   : > { %1531 = vrcp.f32 %v790_v48 }
 0x2b0   : > { %v791_v50 = vadd.f32 1e-16, %v787_v49 }
 0x2b2   : > { %1533 = vrcp.f32 %v791_v50 }
 0x2b4   : > { %v1528_v51 = vpop.eup %1527 }
 0x2b5   : > { %797 = vbcast.lane.b32.xlu0 %v1528_v51, 256 }
 0x2b8   : > { %v1530_v52 = vpop.eup %1529 }
 0x2b9   : > { %v1532_v53 = vpop.eup %1531  ;;  %800 = vbcast.lane.b32.xlu1 %v1530_v52, 256 }
 0x2ba   : > { %803 = vbcast.lane.b32.xlu0 %v1532_v53, 256 }
 0x2bc   : > { %v1534_v54 = vpop.eup %1533 }
 0x2bd   : > { %806 = vbcast.lane.b32.xlu1 %v1534_v54, 256 }
 0x327   : > { %v798_v55 = vpop.permute.xlu0 %797 }
 0x328   : > { %v808_v56 = vmul.f32 %v798_v55, %v1896_v11 }
 0x32a   : > { %813 = vrot.lane.b32.xlu0 %v808_v56, %s1688_s10  ;;  %v1364_v56 = vld [vmem:[%s2070_s4] ss:$0 sm:$0xff] }
 0x32b   : > { %v801_v57 = vpop.permute.xlu1 %800 }
 0x32c   : > { %v809_v58 = vmul.f32 %v801_v57, %v1899_v14  ;;  %v804_v59 = vpop.permute.xlu0 %803 }
 0x32d   : > { %v810_v60 = vmul.f32 %v804_v59, %v1901_v15 }
 0x32e   : > { %890 = vrot.lane.b32.xlu1 %v809_v58, %s1688_s10  ;;  %v1365_v58 = vld [vmem:[%s2071_s5] ss:$0 sm:$0xff] }
 0x32f   : > { %967 = vrot.lane.b32.xlu0 %v810_v60, %s1688_s10  ;;  %v807_v61 = vpop.permute.xlu1 %806 }
 0x330   : > { %v811_v62 = vmul.f32 %v807_v61, %v1905_v16 }
 0x332   : > { %1044 = vrot.lane.b32.xlu1 %v811_v62, %s1688_s10  ;;  %s1613_s10 = sshll.u32 %s1690_s19, 4  ;;  %s1614_s10 = int_to_ptr.vmem [resolvable:$false] %s1613_s10 }
 0x333   : > { %1120 = vrot.lane.b32.xlu0 %v1896_v11, %s1689_s30  ;;  %p1616_p10 = scmp.lt.s32.totalorder %s2021_s27, %s1614_s10 }
 0x336   : > { %1122 = vrot.lane.b32.xlu1 %v1899_v14, %s1689_s30 }
 0x337   : > { %1124 = vrot.lane.b32.xlu0 %v1901_v15, %s1689_s30 }
 0x33a   : > { %1126 = vrot.lane.b32.xlu1 %v1905_v16, %s1689_s30  ;;  %s1615_s30 = scalar_lea.vmem %s1614_s10, 1024 }
 0x33b   : > { %p1617_p13 = scmp.lt.s32.totalorder %s1615_s30, %s1609_s26 }
 0x33d   : > { %p1618_p3 = por %p1617_p13, %p1616_p10 }
 0x33f   : > { %p1619_p7 = pnand %p1618_p3, %p1612_p8 }
 0x39c   : > { %v814_v63 = vpop.permute.xlu0 %813 }
 0x39d   : > { %1430 = vmatpush3.msra.mxu0 %v814_v63 }
 0x39e   : > { %1432 = vmatmul.mubr.msk.f32.vlgmr.msra.gmra.mrb[6].mxu0 %vm715_vm4, %v1952_v8  ;;  %1439 = vmatprep.subr.mxu0 %v1685_v7 }
 0x39f   : > { %1441 = vmatprep.mubr.msk.f32.mxu0 %vm1686_vm1, %v1685_v7 }
 0x3a0   : > { %v891_v0 = vpop.permute.xlu1 %890 }
 0x3a1   : > { %v968_v1 = vpop.permute.xlu0 %967  ;;  %1435 = vmatpush3.msra.mxu1 %v891_v0 }
 0x3a2   : > { %1440 = vmatpush3.msra.mxu0 %v968_v1  ;;  %1437 = vmatmul.mubr.msk.f32.vlgmr.msra.gmra.mrb[6].mxu1 %vm715_vm4, %v1958_v17 }
 0x3a3   : > { %1442 = vmatmul.mubr.msk.f32.vlgmr.msra.gmra.mrb[8].mxu0 %vm715_vm4, %v1964_v20  ;;  %1444 = vmatprep.subr.mxu1 %v1685_v7 }
 0x3a4   : > { %v1045_v11 = vpop.permute.xlu1 %1044  ;;  %1446 = vmatprep.mubr.msk.f32.mxu1 %vm1686_vm1, %v1685_v7 }
 0x3a5   : > { %1445 = vmatpush3.msra.mxu1 %v1045_v11  ;;  %v1121_v14 = vpop.permute.xlu0 %1120 }
 0x3a6   : > { %1447 = vmatmul.mubr.msk.f32.vlgmr.msra.gmra.mrb[8].mxu1 %vm715_vm4, %v1970_v27 }
 0x3a8   : > { %v1123_v3 = vpop.permute.xlu1 %1122 }
 0x3a9   : > { %v1125_v5 = vpop.permute.xlu0 %1124 }
 0x3ac   : > { %v1127_v17 = vpop.permute.xlu1 %1126 }
 0x471   : > { %v885_v15 = vpop.f32.mrb[6].mxu0 }
 0x472   : > { %v1132_v16 = vadd.f32 %v1121_v14, %v885_v15  ;;  %v1433_v2 = vpop.f32.mrb[7].mxu0 }
 0x474   : > { %v1136_v4 = vsel %vm403_vm2, %v1132_v16, 0.0 }
 0x475   : > { %v962_v6 = vpop.f32.mrb[6].mxu1  ;;  %1137 = vadd.xlane.f32.xlu0 %v1136_v4 }
 0x476   : > { %v1133_v8 = vadd.f32 %v1123_v3, %v962_v6  ;;  %v1039_v9 = vpop.f32.mrb[8].mxu0  ;;  %v1438_v10 = vpop.f32.mrb[7].mxu1 }
 0x477   : > { %v1134_v12 = vadd.f32 %v1125_v5, %v1039_v9  ;;  %v1443_v13 = vpop.f32.mrb[9].mxu0 }
 0x478   : > { %v1139_v7 = vsel %vm403_vm2, %v1133_v8, 0.0 }
 0x479   : > { %1140 = vadd.xlane.f32.xlu1 %v1139_v7  ;;  %v1116_v18 = vpop.f32.mrb[8].mxu1  ;;  %v1142_v19 = vsel %vm403_vm2, %v1134_v12, 0.0 }
 0x47a   : > { %v1135_v20 = vadd.f32 %v1127_v17, %v1116_v18  ;;  %1143 = vadd.xlane.f32.xlu0 %v1142_v19  ;;  %v1448_v22 = vpop.f32.mrb[9].mxu1 }
 0x47c   : > { %v1145_v23 = vsel %vm403_vm2, %v1135_v20, 0.0 }
 0x47e   : > { %1146 = vadd.xlane.f32.xlu0 %v1145_v23 }
 0x502   : > { %v1138_v24 = vpop.xlane.xlu0 %1137 }
 0x503   : > { %v1149_v25 = vmul.f32 0.03125, %v1138_v24 }
 0x505   : > { %v1153_v26 = vsub.f32 %v1132_v16, %v1149_v25 }
 0x506   : > { %v1141_v27 = vpop.xlane.xlu1 %1140 }
 0x507   : > { %v1150_v28 = vmul.f32 0.03125, %v1141_v27  ;;  %v1144_v29 = vpop.xlane.xlu0 %1143  ;;  %v1157_v30 = vmul.f32 %v1153_v26, %v1153_v26 }
 0x508   : > { %v1151_v31 = vmul.f32 0.03125, %v1144_v29 }
 0x509   : > { %v1154_v32 = vsub.f32 %v1133_v8, %v1150_v28  ;;  %v1161_v33 = vsel %vm403_vm2, %v1157_v30, 0.0 }
 0x50a   : > { %v1155_v34 = vsub.f32 %v1134_v12, %v1151_v31  ;;  %1162 = vadd.xlane.f32.xlu1 %v1161_v33 }
 0x50b   : > { %v1147_v35 = vpop.xlane.xlu0 %1146  ;;  %v1158_v36 = vmul.f32 %v1154_v32, %v1154_v32 }
 0x50c   : > { %v1152_v37 = vmul.f32 0.03125, %v1147_v35  ;;  %v1159_v38 = vmul.f32 %v1155_v34, %v1155_v34 }
 0x50d   : > { %v1164_v39 = vsel %vm403_vm2, %v1158_v36, 0.0 }
 0x50e   : > { %v1156_v40 = vsub.f32 %v1135_v20, %v1152_v37  ;;  %1165 = vadd.xlane.f32.xlu0 %v1164_v39  ;;  %v1167_v41 = vsel %vm403_vm2, %v1159_v38, 0.0 }
 0x50f   : > { %1168 = vadd.xlane.f32.xlu1 %v1167_v41 }
 0x510   : > { %v1160_v42 = vmul.f32 %v1156_v40, %v1156_v40 }
 0x512   : > { %v1170_v21 = vsel %vm403_vm2, %v1160_v42, 0.0 }
 0x513   : > { %1171 = vadd.xlane.f32.xlu0 %v1170_v21 }
 0x597   : > { %v1163_v43 = vpop.xlane.xlu1 %1162 }
 0x598   : > { %v1173_v44 = vmul.f32 0.03125, %v1163_v43 }
 0x59a   : > { %v1177_v45 = vadd.f32 1e-05, %v1173_v44 }
 0x59b   : > { %v1166_v46 = vpop.xlane.xlu0 %1165 }
 0x59c   : > { %1535 = vrsqrt.f32 %v1177_v45  ;;  %v1169_v47 = vpop.xlane.xlu1 %1168  ;;  %v1174_v48 = vmul.f32 0.03125, %v1166_v46 }
 0x59d   : > { %v1175_v49 = vmul.f32 0.03125, %v1169_v47 }
 0x59e   : > { %v1178_v50 = vadd.f32 1e-05, %v1174_v48 }
 0x59f   : > { %v1179_v51 = vadd.f32 1e-05, %v1175_v49 }
 0x5a0   : > { %1537 = vrsqrt.f32 %v1178_v50  ;;  %v1172_v52 = vpop.xlane.xlu0 %1171 }
 0x5a1   : > { %1539 = vrsqrt.f32 %v1179_v51  ;;  %v1176_v53 = vmul.f32 0.03125, %v1172_v52 }
 0x5a3   : > { %v1180_v54 = vadd.f32 1e-05, %v1176_v53 }
 0x5a5   : > { %1541 = vrsqrt.f32 %v1180_v54 }
 0x5a6   : > { %v1536_v55 = vpop.eup %1535 }
 0x5a7   : > { %v1185_v57 = vmul.f32 %v1536_v55, %v1153_v26 }
 0x5a9   : > { %v1196_v59 = vmul.f32 %v1364_v56, %v1185_v57 }
 0x5aa   : > { %v1538_v60 = vpop.eup %1537 }
 0x5ab   : > { %v1540_v61 = vpop.eup %1539  ;;  %v1207_v62 = vadd.f32 %v1365_v58, %v1196_v59  ;;  %v1186_v63 = vmul.f32 %v1538_v60, %v1154_v32 }
 0x5ac   : > { %v1187_v0 = vmul.f32 %v1540_v61, %v1155_v34 }
 0x5ad   : > { %v1215_v1 = vmin.f32 %v1207_v62, 0.0  ;;  %v1197_v11 = vmul.f32 %v1364_v56, %v1186_v63  ;;  %vm1211_vm5 = vcmp.gt.f32.partialorder %v1207_v62, 0.0 }
 0x5ae   : > { %v1198_v14 = vmul.f32 %v1364_v56, %v1187_v0 }
 0x5af   : > { %v1542_v15 = vpop.eup %1541  ;;  %v1219_v16 = vmul.f32 1.442695, %v1215_v1  ;;  %v1208_v2 = vadd.f32 %v1365_v58, %v1197_v11 }
 0x5b0   : > { %v1209_v3 = vadd.f32 %v1365_v58, %v1198_v14  ;;  %v1188_v4 = vmul.f32 %v1542_v15, %v1156_v40 }
 0x5b1   : > { %1543 = vpow2.f32 %v1219_v16  ;;  %v1216_v5 = vmin.f32 %v1208_v2, 0.0  ;;  %vm1212_vm6 = vcmp.gt.f32.partialorder %v1208_v2, 0.0 }
 0x5b2   : > { %v1217_v6 = vmin.f32 %v1209_v3, 0.0  ;;  %v1199_v8 = vmul.f32 %v1364_v56, %v1188_v4  ;;  %vm1213_vm7 = vcmp.gt.f32.partialorder %v1209_v3, 0.0 }
 0x5b3   : > { %v1221_v9 = vmul.f32 1.442695, %v1216_v5 }
 0x5b4   : > { %v1223_v10 = vmul.f32 1.442695, %v1217_v6  ;;  %v1210_v12 = vadd.f32 %v1365_v58, %v1199_v8 }
 0x5b5   : > { %1545 = vpow2.f32 %v1221_v9 }
 0x5b6   : > { %1547 = vpow2.f32 %v1223_v10  ;;  %v1218_v13 = vmin.f32 %v1210_v12, 0.0  ;;  %vm1214_vm8 = vcmp.gt.f32.partialorder %v1210_v12, 0.0 }
 0x5b8   : > { %v1225_v7 = vmul.f32 1.442695, %v1218_v13 }
 0x5ba   : > { %1549 = vpow2.f32 %v1225_v7 }
 0x5bb   : > { %v1544_v17 = vpop.eup %1543 }
 0x5bc   : > { %v1366_v18 = vadd.f32 -1.0, %v1544_v17 }
 0x5be   : > { %v1231_v19 = vsel %vm1211_vm5, %v1207_v62, %v1366_v18 }
 0x5bf   : > { %v1546_v20 = vpop.eup %1545  ;;  %1235 = vst.msk [vmem:[%s284_s7] sm:$0xff] %vm403_vm2, %v1231_v19 }
 0x5c0   : > { %v1548_v22 = vpop.eup %1547  ;;  %v1367_v23 = vadd.f32 -1.0, %v1546_v20 }
 0x5c1   : > { %v1368_v24 = vadd.f32 -1.0, %v1548_v22 }
 0x5c2   : > { %v1232_v25 = vsel %vm1212_vm6, %v1208_v2, %v1367_v23 }
 0x5c3   : > { %v1233_v26 = vsel %vm1213_vm7, %v1209_v3, %v1368_v24  ;;  %1236 = vst.msk [vmem:[%s284_s7 + $0x8] sm:$0xff] %vm403_vm2, %v1232_v25 }
 0x5c4   : > { %v1550_v27 = vpop.eup %1549  ;;  %1237 = vst.msk [vmem:[%s284_s7 + $0x10] sm:$0xff] %vm403_vm2, %v1233_v26 }
 0x5c5   : > { %v1369_v28 = vadd.f32 -1.0, %v1550_v27 }
 0x5c7   : > { %v1234_v29 = vsel %vm1214_vm8, %v1210_v12, %v1369_v28 }
 0x5c8   : > { %1238 = vst.msk [vmem:[%s284_s7 + $0x18] sm:$0xff] %vm403_vm2, %v1234_v29 }
 0x5c9   : > { %1622 = shalt.err (!%p1619_p7)
}
 0x5ca   : > { %s1623_s8 = scalar_lea.hbm %s2019_s20, 512  ;;  %s1627_s18 = scalar_lea.hbm %s2072_s6, 1024 }
 0x5cb   : > { %p1624_p9 = scmp.ne.s32.totalorder %s2019_s20, %s1623_s8  ;;  %p1628_p5 = scmp.lt.u32.totalorder %s2019_s20, %s2072_s6 }
 0x5cc   : > { %p1629_p11 = scmp.lt.u32.totalorder %s1627_s18, %s1623_s8  ;;  %p1631_p4 = scmp.lt.u32.totalorder %s1623_s8, %s2019_s20 }
 0x5cd   : > { %p1625_p1 = pnand %p1624_p9, %p1822_p12 }
 0x5ce   : > { %p1630_p2 = por %p1629_p11, %p1628_p5 }
 0x5cf   : > { %p1626_p0 = pneg %p1625_p1 }
 0x5d0   : > { %p1632_p6 = por %p1631_p4, %p1630_p2 }
 0x5d2   : > { %p1633_p8 = pnand %p1632_p6, %p1626_p0 }
 0x5d4   : > { %1636 = shalt.err (!%p1633_p8)
}
 0x5d5   : > { %s1691_s17 = smov 128   ;;  %s1692_s29 = smov 8  }
 0x5d6   : > { %1459 = dma.vmem_to_hbm [thread:$0]  (%p1822_p12), %s2021_s27, 512, %s2019_s20, %s1240_s25, %s1691_s17, %s1691_s17, %s1692_s29  }
 0x5d7 PF: > { %s1268_s26 = sand.u32 1, %s1667_s21   ;;  %p2087_p10 = scmp.ne.s32.totalorder %s2077_s28, 0 }
 0x5d8   : > { %p2088_p13 = scmp.ge.s32.totalorder %s1679_s24, 2  ;;  %s1269_s19 = scalar_lea.sflag [#allocation4], %s1268_s26 }
 0x5da   : > { %p1470_p3 = pnand %p2088_p13, %p2087_p10 }
 0x5dc   : > { %1662 = dma.done.wait (!%p1470_p3), %s1269_s19, 512  }
 0x5dd   : > { %1664 = vsyncadd (!%p1470_p3), %s1269_s19, 4294966784  ;;  %p20_p7 = scmp.ge.s32.totalorder %s1784_s9, 4   ;;  %s2089_s21 = smov %s1671_s22 }
 0x5de   : > { %s2090_s22 = smov %s1675_s23  ;;  %s2091_s23 = smov %s1818_s13 }
 0x5df   : > { %s2092_s24 = smov %s1784_s9  ;;  %22 = sbr.rel (!%p20_p7) target bundleno = 6 (0x6), region = 93 }
 0x5e6   :  { %1274 = vsyncpa [#allocation3], 1 }
 0x5e7   :  { %1276 = vsyncpa [#allocation3 + $0x1], 1 }
 0x5e8   :  { %1277 = vsyncpa [#allocation6], 1 }
 0x5e9   :  { %1278 = vsyncpa [#allocation4], 1 }
 0x5ea   :  { %1280 = vsyncpa [#allocation4 + $0x1], 1 }

</bundles_post_ra>
